<compile_context>
chip_gen: v6e
topology: v6e:2x2x1
jax: 0.10.0
libtpu: 0.0.40
codegen_flags: <defaults>
</compile_context>

<pallas_src>
import jax
import jax.numpy as jnp
from jax.experimental import pallas as pl
from jax.experimental.pallas import tpu as pltpu


def _round_up(x, m):
    return ((x + m - 1) // m) * m


def _pad2d(a, rows, cols):
    return jnp.pad(a, ((0, rows - a.shape[0]), (0, cols - a.shape[1])))


# ---------------------------------------------------------------------------
# Kernel
# ---------------------------------------------------------------------------
def mlp_readout_kernel(x_ref, w0_ref, b0_ref, w1_ref, b1_ref, w2_ref, b2_ref,
                       o_ref):
    """One batch tile: 3x (matmul + bias [+ relu]); weights already [in, out]."""
    cdt = w0_ref.dtype            # compute dtype (bf16); MXU accumulates in f32
    # In-kernel cast of the f32 x tile (saves a separate HBM cast pass in the wrapper).
    x = x_ref[...].astype(cdt)
    # Layer 0: Linear -> ReLU (dropout = identity at inference)
    h = jnp.dot(x, w0_ref[...], preferred_element_type=jnp.float32) + b0_ref[...]
    h = jnp.maximum(h, 0.0).astype(cdt)
    # Layer 1: Linear -> ReLU
    h = jnp.dot(h, w1_ref[...], preferred_element_type=jnp.float32) + b1_ref[...]
    h = jnp.maximum(h, 0.0).astype(cdt)
    # Final layer: Linear (no activation). w2 is unpadded in its output dim, so this
    # writes exactly d_out columns (no padded slab, no post-call slice).
    out = jnp.dot(h, w2_ref[...], preferred_element_type=jnp.float32) + b2_ref[...]
    o_ref[...] = out.astype(o_ref.dtype)


# ---------------------------------------------------------------------------
# One-time parameter preparation (hoisted out of the forward path)
# ---------------------------------------------------------------------------
def prepare_params(params, compute_dtype=jnp.bfloat16):
    """Transpose to [in, out], pad hidden widths to 128, cast weights to bf16.

    Done ONCE at init; the forward path never re-runs layout work. The final
    layer keeps its true output width so the kernel's store is exactly d_out
    columns wide.  (If readout precision matters downstream, w2 could be kept
    f32 here — K is tiny so the extra cost is negligible.)
    """
    w0, b0, w1, b1, w2, b2 = params
    d_in = w0.shape[1]
    d0, d1, d_out = w0.shape[0], w1.shape[0], w2.shape[0]
    d0p, d1p = _round_up(d0, 128), _round_up(d1, 128)   # lane-dense hidden widths

    w0t = _pad2d(w0.T, d_in, d0p).astype(compute_dtype)
    w1t = _pad2d(w1.T, d0p, d1p).astype(compute_dtype)
    w2t = _pad2d(w2.T, d1p, d_out).astype(compute_dtype)   # output dim left unpadded
    b0p = _pad2d(b0, 1, d0p).astype(jnp.float32)
    b1p = _pad2d(b1, 1, d1p).astype(jnp.float32)
    b2p = b2.astype(jnp.float32)
    return (w0t, b0p, w1t, b1p, w2t, b2p)


# ---------------------------------------------------------------------------
# Hardware-aware tiling policy
# ---------------------------------------------------------------------------
def _tpu_policy():
    """Returns (vmem working budget, scoped vmem limit, # TensorCores)."""
    kind = ""
    try:
        kind = jax.devices()[0].device_kind.lower()
    except Exception:
        pass
    is_v7 = "v7" in kind
    num_tc = 2 if is_v7 else 1                      # v7x: 2 TCs/chip; v5e/v6e: 1
    try:
        vmem_phys = int(pltpu.get_tpu_info().vmem_capacity_bytes)
    except Exception:
        vmem_phys = (64 if is_v7 else 128) * 1024 * 1024
    if vmem_phys <= 64 * 1024 * 1024:
        # v7x: 64 MiB/TC — stay lean, leave headroom for Mosaic internal scratch.
        budget, limit = 24 * 1024 * 1024, 34 * 1024 * 1024
    else:
        # v5e/v6e: 128 MiB physical — use most of it; bigger tiles amortize
        # per-step overhead and approach the HBM roofline.
        budget, limit = 80 * 1024 * 1024, 96 * 1024 * 1024
    limit = min(limit, vmem_phys - 8 * 1024 * 1024)
    return budget, limit, num_tc


def _choose_block_rows(n, d_in, d0p, d1p, d_out, w_bytes, budget, num_tc):
    """Row-tile size from the generation-aware VMEM budget."""
    lane_out = _round_up(max(d_out, 1), 128)            # VMEM lane padding of out tile
    per_row = (2 * d_in * 4                              # f32 x tile, double-buffered
               + 2 * lane_out * 4                        # out tile, double-buffered
               + (d0p + d1p + lane_out) * 4)             # f32 layer intermediates
    resident = 2 * ((d_in * d0p + d0p * d1p + d1p * d_out) * w_bytes
                    + (d0p + d1p + d_out) * 4)           # grid-invariant weights/biases
    avail = max(budget - resident, 1 << 20)
    tm_cap = min(avail // per_row, 4096)                 # cap raised: per-row cost is tiny
    tm_cap = max(16, (tm_cap // 16) * 16)

    if num_tc <= 1:
        # Single TensorCore (v5e/v6e): one full-batch block is fastest whenever it
        # fits — splitting only adds per-step overhead and an extra DMA handoff.
        if n <= tm_cap:
            return int(n)
        return int(tm_cap)

    # v7x (2 TCs): want >= 2 grid steps per core so each core's x/out DMA pipelines,
    # and a step count that is a multiple of the core count for load balance.
    min_steps = 2 * num_tc
    if n <= tm_cap and n <= min_steps * 16:
        return int(n)                                    # too small to split profitably
    tm = min(tm_cap, max(16, -(-n // min_steps)))
    return int(max(16, (tm // 16) * 16))


# ---------------------------------------------------------------------------
# Forward wrapper
# ---------------------------------------------------------------------------
def mlp_readout(x, prepped, *, block_rows=None):
    """Fused MLPReadout forward.

    x: [N, input_dim] float32.
    prepped: output of prepare_params(params) — weights already [in, out],
    lane-padded hiddens, bf16; biases f32.
    """
    w0t, b0, w1t, b1, w2t, b2 = prepped
    n, d_in = x.shape
    d0p, d1p, d_out = w0t.shape[1], w1t.shape[1], w2t.shape[1]
    cbytes = jnp.dtype(w0t.dtype).itemsize

    budget, vmem_limit, num_tc = _tpu_policy()
    tm = (block_rows if block_rows is not None
          else _choose_block_rows(n, d_in, d0p, d1p, d_out, cbytes, budget, num_tc))
    grid = (pl.cdiv(n, tm),)

    invariant_bytes = sum(int(a.size) * a.dtype.itemsize
                          for a in (w0t, b0, w1t, b1, w2t, b2))
    # v7x only: single-buffer the grid-invariant weights when they are large enough
    # to matter (halves their resident footprint -> room for a bigger row tile).
    single_buf = (num_tc >= 2) and (invariant_bytes > (4 << 20))

    def full(arr):
        if single_buf:
            return pl.BlockSpec(arr.shape, lambda i: (0, 0),
                                pipeline_mode=pl.Buffered(1))
        return pl.BlockSpec(arr.shape, lambda i: (0, 0))

    # Advisory cost estimate: actually-executed matmul flops, actual array bytes
    # (output uses the true d_out — no padded slab any more).
    flops = 2 * n * (d_in * d0p + d0p * d1p + d1p * d_out)
    bytes_accessed = n * d_in * 4 + invariant_bytes + n * d_out * 4

    out = pl.pallas_call(
        mlp_readout_kernel,
        out_shape=jax.ShapeDtypeStruct((n, d_out), x.dtype),
        grid_spec=pltpu.PrefetchScalarGridSpec(
            num_scalar_prefetch=0,
            grid=grid,
            in_specs=[
                pl.BlockSpec((tm, d_in), lambda i: (i, 0)),  # batch-tiled f32 x
                full(w0t), full(b0),
                full(w1t), full(b1),
                full(w2t), full(b2),
            ],
            out_specs=pl.BlockSpec((tm, d_out), lambda i: (i, 0)),
        ),
        compiler_params=pltpu.CompilerParams(
            dimension_semantics=("parallel",),
            vmem_limit_bytes=int(vmem_limit)),
        cost_estimate=pl.CostEstimate(
            flops=flops, transcendentals=0, bytes_accessed=bytes_accessed),
    )(x, w0t, b0, w1t, b1, w2t, b2)
    return out


# ---------------------------------------------------------------------------
# Init + reference
# ---------------------------------------------------------------------------
def init_params(key, input_dim, output_dim, L=2):
    """nn.Linear-style init (uniform +-1/sqrt(fan_in)); PyTorch [out, in] layout."""
    dims = [input_dim // (2 ** l) for l in range(L + 1)] + [output_dim]
    params = []
    for l in range(L + 1):
        fan_in, fan_out = dims[l], dims[l + 1]
        key, kw, kb = jax.random.split(key, 3)
        bound = 1.0 / (fan_in ** 0.5)
        w = jax.random.uniform(kw, (fan_out, fan_in), jnp.float32,
                               minval=-bound, maxval=bound)
        b = jax.random.uniform(kb, (1, fan_out), jnp.float32,
                               minval=-bound, maxval=bound)
        params += [w, b]
    return tuple(params)


def mlp_readout_reference(x, params, compute_dtype=jnp.float32):
    """Pure-JAX reference; compute_dtype=bf16 emulates the kernel's compute path."""
    w0, b0, w1, b1, w2, b2 = params
    c = lambda a: a.astype(compute_dtype)
    h = jnp.dot(c(x), c(w0).T, preferred_element_type=jnp.float32) + b0
    h = jnp.maximum(h, 0.0)
    h = jnp.dot(c(h), c(w1).T, preferred_element_type=jnp.float32) + b1
    h = jnp.maximum(h, 0.0)
    return jnp.dot(c(h), c(w2).T, preferred_element_type=jnp.float32) + b2


if __name__ == "__main__":
    N, INPUT_DIM, OUTPUT_DIM, L = 256, 32, 4, 2

    key = jax.random.PRNGKey(0)
    key, kx = jax.random.split(key)
    x = jax.random.normal(kx, (N, INPUT_DIM), jnp.float32)
    params = init_params(key, INPUT_DIM, OUTPUT_DIM, L=L)

    # One-time weight prep (hoisted out of the forward path).
    prepped = jax.tree.map(jax.block_until_ready, prepare_params(params))

    out = jax.block_until_ready(mlp_readout(x, prepped))
    assert out.shape == (N, OUTPUT_DIM)

    # Tight check vs a reference that emulates the kernel's bf16 compute path.
    ref_bf16 = mlp_readout_reference(x, params, compute_dtype=jnp.bfloat16)
    assert jnp.allclose(out, ref_bf16, atol=1e-4, rtol=1e-4), "mismatch vs bf16 reference"

    # Loose sanity check vs the full-f32 reference (bf16 quantization tolerance).
    ref_f32 = mlp_readout_reference(x, params, compute_dtype=jnp.float32)
    assert jnp.allclose(out, ref_f32, atol=5e-2, rtol=5e-2), "mismatch vs f32 reference"

    print("KERNEL_OK")
</pallas_src>

<mosaic_0001>
module attributes {stable_mosaic.version = 11 : i64} {
  func.func @mlp_readout_kernel(%arg0: i32, %arg1: memref<256x32xf32, #tpu.memory_space<vmem>>, %arg2: memref<32x128xbf16, #tpu.memory_space<vmem>>, %arg3: memref<1x128xf32, #tpu.memory_space<vmem>>, %arg4: memref<128x128xbf16, #tpu.memory_space<vmem>>, %arg5: memref<1x128xf32, #tpu.memory_space<vmem>>, %arg6: memref<128x4xbf16, #tpu.memory_space<vmem>>, %arg7: memref<1x4xf32, #tpu.memory_space<vmem>>, %arg8: memref<256x4xf32, #tpu.memory_space<vmem>>) attributes {dimension_semantics = [#tpu.dimension_semantics<parallel>], iteration_bounds = array<i64: 1>, scalar_prefetch = 0 : i64, scratch_operands = 0 : i64, tpu.core_type = #tpu.core_type<tc>, window_params = [{transform_indices = @transform_0, window_bounds = array<i64: 256, 32>}, {pipeline_mode = #tpu.pipeline_mode<synchronous>, transform_indices = @transform_1, window_bounds = array<i64: 32, 128>}, {pipeline_mode = #tpu.pipeline_mode<synchronous>, transform_indices = @transform_2, window_bounds = array<i64: 1, 128>}, {pipeline_mode = #tpu.pipeline_mode<synchronous>, transform_indices = @transform_3, window_bounds = array<i64: 128, 128>}, {pipeline_mode = #tpu.pipeline_mode<synchronous>, transform_indices = @transform_4, window_bounds = array<i64: 1, 128>}, {pipeline_mode = #tpu.pipeline_mode<synchronous>, transform_indices = @transform_5, window_bounds = array<i64: 128, 4>}, {pipeline_mode = #tpu.pipeline_mode<synchronous>, transform_indices = @transform_6, window_bounds = array<i64: 1, 4>}, {transform_indices = @transform_7, window_bounds = array<i64: 256, 4>}]} {
    %c0 = arith.constant 0 : index
    %c0_0 = arith.constant 0 : index
    %0 = vector.load %arg1[%c0, %c0_0] : memref<256x32xf32, #tpu.memory_space<vmem>>, vector<256x32xf32>
    %1 = arith.truncf %0 : vector<256x32xf32> to vector<256x32xbf16>
    %c0_1 = arith.constant 0 : index
    %c0_2 = arith.constant 0 : index
    %2 = vector.load %arg2[%c0_1, %c0_2] : memref<32x128xbf16, #tpu.memory_space<vmem>>, vector<32x128xbf16>
    %cst = arith.constant dense<0.000000e+00> : vector<256x128xf32>
    %3 = tpu.matmul %1, %2, %cst {dimension_numbers = #tpu.dot_dimension_numbers<[1], [0], [0], [1], [0, 0, 1, 1], [], []>} : vector<256x32xbf16>, vector<32x128xbf16>, vector<256x128xf32> -> vector<256x128xf32>
    %c0_3 = arith.constant 0 : index
    %c0_4 = arith.constant 0 : index
    %4 = vector.load %arg3[%c0_3, %c0_4] : memref<1x128xf32, #tpu.memory_space<vmem>>, vector<1x128xf32>
    %5 = vector.broadcast %4 : vector<1x128xf32> to vector<256x128xf32>
    %6 = arith.addf %3, %5 : vector<256x128xf32>
    %cst_5 = arith.constant 0.000000e+00 : f32
    %7 = vector.broadcast %cst_5 : f32 to vector<256x128xf32>
    %8 = arith.maximumf %6, %7 : vector<256x128xf32>
    %9 = arith.truncf %8 : vector<256x128xf32> to vector<256x128xbf16>
    %c0_6 = arith.constant 0 : index
    %c0_7 = arith.constant 0 : index
    %10 = vector.load %arg4[%c0_6, %c0_7] : memref<128x128xbf16, #tpu.memory_space<vmem>>, vector<128x128xbf16>
    %cst_8 = arith.constant dense<0.000000e+00> : vector<256x128xf32>
    %11 = tpu.matmul %9, %10, %cst_8 {dimension_numbers = #tpu.dot_dimension_numbers<[1], [0], [0], [1], [0, 0, 1, 1], [], []>} : vector<256x128xbf16>, vector<128x128xbf16>, vector<256x128xf32> -> vector<256x128xf32>
    %c0_9 = arith.constant 0 : index
    %c0_10 = arith.constant 0 : index
    %12 = vector.load %arg5[%c0_9, %c0_10] : memref<1x128xf32, #tpu.memory_space<vmem>>, vector<1x128xf32>
    %13 = vector.broadcast %12 : vector<1x128xf32> to vector<256x128xf32>
    %14 = arith.addf %11, %13 : vector<256x128xf32>
    %cst_11 = arith.constant 0.000000e+00 : f32
    %15 = vector.broadcast %cst_11 : f32 to vector<256x128xf32>
    %16 = arith.maximumf %14, %15 : vector<256x128xf32>
    %17 = arith.truncf %16 : vector<256x128xf32> to vector<256x128xbf16>
    %c0_12 = arith.constant 0 : index
    %c0_13 = arith.constant 0 : index
    %18 = vector.load %arg6[%c0_12, %c0_13] : memref<128x4xbf16, #tpu.memory_space<vmem>>, vector<128x4xbf16>
    %cst_14 = arith.constant dense<0.000000e+00> : vector<256x4xf32>
    %19 = tpu.matmul %17, %18, %cst_14 {dimension_numbers = #tpu.dot_dimension_numbers<[1], [0], [0], [1], [0, 0, 1, 1], [], []>} : vector<256x128xbf16>, vector<128x4xbf16>, vector<256x4xf32> -> vector<256x4xf32>
    %c0_15 = arith.constant 0 : index
    %c0_16 = arith.constant 0 : index
    %20 = vector.load %arg7[%c0_15, %c0_16] : memref<1x4xf32, #tpu.memory_space<vmem>>, vector<1x4xf32>
    %21 = vector.broadcast %20 : vector<1x4xf32> to vector<256x4xf32>
    %22 = arith.addf %19, %21 : vector<256x4xf32>
    %c0_17 = arith.constant 0 : index
    %c0_18 = arith.constant 0 : index
    %23 = vector.load %arg8[%c0_17, %c0_18] : memref<256x4xf32, #tpu.memory_space<vmem>>, vector<256x4xf32>
    tpu.vector_store %arg8[%c0_17, %c0_18], %22 {strides = array<i32>} : memref<256x4xf32, #tpu.memory_space<vmem>>, vector<256x4xf32>,
    return
  }
  func.func @transform_0(%arg0: i32) -> (i32, i32) {
    %c0_i32 = arith.constant 0 : i32
    %c0_i32_0 = arith.constant 0 : i32
    return %arg0, %c0_i32 : i32, i32
  }
  func.func @transform_1(%arg0: i32) -> (i32, i32) {
    %c0_i32 = arith.constant 0 : i32
    %c0_i32_0 = arith.constant 0 : i32
    %c0_i32_1 = arith.constant 0 : i32
    return %c0_i32, %c0_i32_0 : i32, i32
  }
  func.func @transform_2(%arg0: i32) -> (i32, i32) {
    %c0_i32 = arith.constant 0 : i32
    %c0_i32_0 = arith.constant 0 : i32
    %c0_i32_1 = arith.constant 0 : i32
    return %c0_i32, %c0_i32_0 : i32, i32
  }
  func.func @transform_3(%arg0: i32) -> (i32, i32) {
    %c0_i32 = arith.constant 0 : i32
    %c0_i32_0 = arith.constant 0 : i32
    %c0_i32_1 = arith.constant 0 : i32
    return %c0_i32, %c0_i32_0 : i32, i32
  }
  func.func @transform_4(%arg0: i32) -> (i32, i32) {
    %c0_i32 = arith.constant 0 : i32
    %c0_i32_0 = arith.constant 0 : i32
    %c0_i32_1 = arith.constant 0 : i32
    return %c0_i32, %c0_i32_0 : i32, i32
  }
  func.func @transform_5(%arg0: i32) -> (i32, i32) {
    %c0_i32 = arith.constant 0 : i32
    %c0_i32_0 = arith.constant 0 : i32
    %c0_i32_1 = arith.constant 0 : i32
    return %c0_i32, %c0_i32_0 : i32, i32
  }
  func.func @transform_6(%arg0: i32) -> (i32, i32) {
    %c0_i32 = arith.constant 0 : i32
    %c0_i32_0 = arith.constant 0 : i32
    %c0_i32_1 = arith.constant 0 : i32
    return %c0_i32, %c0_i32_0 : i32, i32
  }
  func.func @transform_7(%arg0: i32) -> (i32, i32) {
    %c0_i32 = arith.constant 0 : i32
    %c0_i32_0 = arith.constant 0 : i32
    return %arg0, %c0_i32 : i32, i32
  }
}

</mosaic_0001>

<bundles_post_ra>
// kernel: tpu_custom_call.1
= control target key start
LH: loop header
LB: loop body
LE: loop exit
PB: predicated region body
PF: predicated region fallthrough
CT: control target
= control target key end

     0   :  { %vm98_vm0 = vcmask 261120   ;;  %vm868_vm1 = vcmask 31744   ;;  %s1622_s1 = inlined_call_operand.vmem [shape: bf16[32,128], index: 1, kind: input, shape index: {}]   ;;  %s1623_s0 = inlined_call_operand.vmem [shape: f32[256,32], index: 0, kind: input, shape index: {}]   ;;  %s1624_s3 = inlined_call_operand.vmem [shape: bf16[128,128], index: 3, kind: input, shape index: {}]   ;;  %s1625_s5 = inlined_call_operand.vmem [shape: bf16[128,4], index: 5, kind: input, shape index: {}]   ;;  %s1626_s2 = inlined_call_operand.vmem [shape: f32[1,128], index: 2, kind: input, shape index: {}]   ;;  %s1627_s4 = inlined_call_operand.vmem [shape: f32[1,128], index: 4, kind: input, shape index: {}]   ;;  %s1628_s6 = inlined_call_operand.vmem [shape: f32[1,4], index: 6, kind: input, shape index: {}]   ;;  %s1629_s7 = inlined_call_operand.vmem [shape: f32[256,4], index: 7, kind: output, shape index: {}]  }
   0x1   :  { %v1144_v0 = vld [vmem:[%s1622_s1 + $0x8] sm:$0xff]   ;;  %v1145_v1 = vld [vmem:[%s1622_s1] sm:$0xff]   ;;  %v29_v5 = vld [vmem:[%s1623_s0 + $0x10] sm:$0xff] }
   0x2   :  { %1008 = vmatprep.subr.bf16.mxu0 %v1144_v0  ;;  %v27_v2 = vld [vmem:[%s1623_s0] sm:$0xff]  ;;  %v28_v3 = vld [vmem:[%s1623_s0 + $0x8] sm:$0xff]  ;;  %1140 = vmatprep.subr.bf16.mxu1 %v1144_v0  ;;  %v30_v6 = vld [vmem:[%s1623_s0 + $0x18] sm:$0xff] }
   0x3   :  { %1009 = vmatpush3.bf16.msra.mxu0 %v1144_v0  ;;  %v59_v4 = vpack.c.bf16 %v28_v3, %v27_v2  ;;  %1142 = vmatpush3.bf16.msra.mxu1 %v1144_v0  ;;  %v31_v7 = vld [vmem:[%s1623_s0 + $0x20] sm:$0xff]  ;;  %v32_v8 = vld [vmem:[%s1623_s0 + $0x28] sm:$0xff]  ;;  %v60_v9 = vpack.c.bf16 %v30_v6, %v29_v5  ;;  %v45_v14 = vld [vmem:[%s1623_s0 + $0x90] sm:$0xff] }
   0x4   :  { %1010 = vmatprep.subr.bf16.mxu0 %v1145_v1  ;;  %1141 = vmatprep.subr.bf16.mxu1 %v1145_v1  ;;  %v61_v10 = vpack.c.bf16 %v32_v8, %v31_v7  ;;  %v43_v11 = vld [vmem:[%s1623_s0 + $0x80] sm:$0xff]  ;;  %v44_v12 = vld [vmem:[%s1623_s0 + $0x88] sm:$0xff]  ;;  %v46_v15 = vld [vmem:[%s1623_s0 + $0x98] sm:$0xff] }
   0x5   :  { %1012 = vmatprep.mubr.msk.bf16.mxu0 %vm98_vm0, %v59_v4  ;;  %v67_v13 = vpack.c.bf16 %v44_v12, %v43_v11  ;;  %v47_v16 = vld [vmem:[%s1623_s0 + $0xa0] sm:$0xff]  ;;  %v68_v17 = vpack.c.bf16 %v46_v15, %v45_v14  ;;  %v48_v18 = vld [vmem:[%s1623_s0 + $0xa8] sm:$0xff]  ;;  %v33_v19 = vld [vmem:[%s1623_s0 + $0x30] sm:$0xff] }
   0x6   :  { %v34_v20 = vld [vmem:[%s1623_s0 + $0x38] sm:$0xff]  ;;  %v35_v21 = vld [vmem:[%s1623_s0 + $0x40] sm:$0xff]  ;;  %v69_v22 = vpack.c.bf16 %v48_v18, %v47_v16  ;;  %v36_v23 = vld [vmem:[%s1623_s0 + $0x48] sm:$0xff] }
   0x7   :  { %1011 = vmatpush3.bf16.msra.mxu0 %v1145_v1  ;;  %1143 = vmatpush3.bf16.msra.mxu1 %v1145_v1  ;;  %v49_v24 = vld [vmem:[%s1623_s0 + $0xb0] sm:$0xff]  ;;  %v50_v25 = vld [vmem:[%s1623_s0 + $0xb8] sm:$0xff]  ;;  %v51_v26 = vld [vmem:[%s1623_s0 + $0xc0] sm:$0xff]  ;;  %v62_v29 = vpack.c.bf16 %v34_v20, %v33_v19  ;;  %v63_v31 = vpack.c.bf16 %v36_v23, %v35_v21 }
   0x8   :  { %1028 = vmatprep.mubr.msk.bf16.mxu1 %vm98_vm0, %v67_v13  ;;  %v52_v27 = vld [vmem:[%s1623_s0 + $0xc8] sm:$0xff]  ;;  %v1146_v28 = vld [vmem:[%s1624_s3 + $0x38] sm:$0xff]   ;;  %v1147_v30 = vld [vmem:[%s1624_s3 + $0x30] sm:$0xff]   ;;  %v70_v32 = vpack.c.bf16 %v50_v25, %v49_v24 }
   0x9   :  { %1044 = vmatprep.subr.bf16.mxu1 %v1146_v28  ;;  %v71_v33 = vpack.c.bf16 %v52_v27, %v51_v26  ;;  %v37_v34 = vld [vmem:[%s1623_s0 + $0x50] sm:$0xff]  ;;  %v38_v35 = vld [vmem:[%s1623_s0 + $0x58] sm:$0xff]  ;;  %v1148_v36 = vld [vmem:[%s1624_s3 + $0x28] sm:$0xff]  }
   0xa   :  { %1013 = vmatmul.mubr.msk.bf16.vlgmr.msra.gmra.mxu0 %vm98_vm0, %v60_v9  ;;  %1029 = vmatmul.mubr.msk.bf16.vlgmr.msra.gmra.mxu1 %vm98_vm0, %v68_v17  ;;  %v39_v37 = vld [vmem:[%s1623_s0 + $0x60] sm:$0xff]  ;;  %v40_v38 = vld [vmem:[%s1623_s0 + $0x68] sm:$0xff]  ;;  %v53_v39 = vld [vmem:[%s1623_s0 + $0xd0] sm:$0xff]  ;;  %v64_v44 = vpack.c.bf16 %v38_v35, %v37_v34 }
   0xb   :  { %1016 = vmatprep.mubr.msk.bf16.mxu0 %vm98_vm0, %v61_v10  ;;  %1032 = vmatprep.mubr.msk.bf16.mxu1 %vm98_vm0, %v69_v22  ;;  %v54_v40 = vld [vmem:[%s1623_s0 + $0xd8] sm:$0xff]  ;;  %v55_v41 = vld [vmem:[%s1623_s0 + $0xe0] sm:$0xff]  ;;  %v56_v42 = vld [vmem:[%s1623_s0 + $0xe8] sm:$0xff]  ;;  %v65_v45 = vpack.c.bf16 %v40_v38, %v39_v37 }
   0xc   :  { %1045 = vmatpush3.bf16.msra.mxu1 %v1146_v28  ;;  %v1149_v43 = vld [vmem:[%s1624_s3 + $0x20] sm:$0xff]   ;;  %v72_v46 = vpack.c.bf16 %v54_v40, %v53_v39  ;;  %v73_v47 = vpack.c.bf16 %v56_v42, %v55_v41  ;;  %v1150_v48 = vld [vmem:[%s1624_s3 + $0x18] sm:$0xff]   ;;  %v41_v49 = vld [vmem:[%s1623_s0 + $0x70] sm:$0xff] }
   0xd   :  { %1046 = vmatprep.subr.bf16.mxu1 %v1147_v30  ;;  %v42_v50 = vld [vmem:[%s1623_s0 + $0x78] sm:$0xff]  ;;  %v57_v51 = vld [vmem:[%s1623_s0 + $0xf0] sm:$0xff]  ;;  %v1152_v56 = vld [vmem:[%s1624_s3 + $0x8] sm:$0xff]  }
   0xe   :  { %v58_v52 = vld [vmem:[%s1623_s0 + $0xf8] sm:$0xff]  ;;  %v66_v53 = vpack.c.bf16 %v42_v50, %v41_v49  ;;  %v1151_v55 = vld [vmem:[%s1624_s3 + $0x10] sm:$0xff]   ;;  %v1153_v57 = vld [vmem:[%s1624_s3] sm:$0xff]  }
   0xf   :  { %v74_v54 = vpack.c.bf16 %v58_v52, %v57_v51  ;;  %v1154_v58 = vld [vmem:[%s1625_s5 + $0x38] sm:$0xff]   ;;  %v1155_v59 = vld [vmem:[%s1625_s5 + $0x30] sm:$0xff]   ;;  %v1156_v60 = vld [vmem:[%s1625_s5 + $0x28] sm:$0xff]  }
  0x10   :  { %1047 = vmatpush3.bf16.msra.mxu1 %v1147_v30  ;;  %1092 = vmatprep.subr.bf16.mxu0 %v1154_v58  ;;  %v1157_v61 = vld [vmem:[%s1625_s5 + $0x20] sm:$0xff]   ;;  %v1158_v62 = vld [vmem:[%s1625_s5 + $0x18] sm:$0xff]  }
  0x11   :  { %1048 = vmatprep.subr.bf16.mxu1 %v1148_v36  ;;  %1093 = vmatpush3.bf16.msra.mxu0 %v1154_v58  ;;  %v1364_v2 = vld [vmem:[%s1626_s2] ss:$0 sm:$0xff] }
  0x12   :  { %1017 = vmatmul.mubr.msk.bf16.gmra.mxu0 %vm98_vm0, %v62_v29  ;;  %1033 = vmatmul.mubr.msk.bf16.gmra.mxu1 %vm98_vm0, %v70_v32 }
  0x13   :  { %1020 = vmatprep.mubr.msk.bf16.mxu0 %vm98_vm0, %v63_v31  ;;  %1036 = vmatprep.mubr.msk.bf16.mxu1 %vm98_vm0, %v71_v33 }
  0x14   :  { %1049 = vmatpush3.bf16.msra.mxu1 %v1148_v36  ;;  %1094 = vmatprep.subr.bf16.mxu0 %v1155_v59 }
  0x15   :  { %1050 = vmatprep.subr.bf16.mxu1 %v1149_v43  ;;  %1095 = vmatpush3.bf16.msra.mxu0 %v1155_v59 }
  0x16   :  { %1096 = vmatprep.subr.bf16.mxu0 %v1156_v60 }
  0x18   :  { %1051 = vmatpush3.bf16.msra.mxu1 %v1149_v43 }
  0x19   :  { %1052 = vmatprep.subr.bf16.mxu1 %v1150_v48  ;;  %1097 = vmatpush3.bf16.msra.mxu0 %v1156_v60 }
  0x1a   :  { %1021 = vmatmul.mubr.msk.bf16.gmra.mxu0 %vm98_vm0, %v64_v44  ;;  %1037 = vmatmul.mubr.msk.bf16.gmra.mxu1 %vm98_vm0, %v72_v46 }
  0x1b   :  { %1024 = vmatprep.mubr.msk.bf16.mxu0 %vm98_vm0, %v65_v45  ;;  %1040 = vmatprep.mubr.msk.bf16.mxu1 %vm98_vm0, %v73_v47 }
  0x1c   :  { %1053 = vmatpush3.bf16.msra.mxu1 %v1150_v48  ;;  %1098 = vmatprep.subr.bf16.mxu0 %v1157_v61 }
  0x1d   :  { %1054 = vmatprep.subr.bf16.mxu1 %v1151_v55  ;;  %1099 = vmatpush3.bf16.msra.mxu0 %v1157_v61 }
  0x1e   :  { %1100 = vmatprep.subr.bf16.mxu0 %v1158_v62 }
  0x20   :  { %1055 = vmatpush3.bf16.msra.mxu1 %v1151_v55 }
  0x21   :  { %1056 = vmatprep.subr.bf16.mxu1 %v1152_v56  ;;  %1101 = vmatpush3.bf16.msra.mxu0 %v1158_v62 }
  0x22   :  { %1025 = vmatmul.mubr.msk.bf16.gmra.mxu0 %vm98_vm0, %v66_v53  ;;  %1041 = vmatmul.mubr.msk.bf16.gmra.mxu1 %vm98_vm0, %v74_v54 }
  0x24   :  { %1057 = vmatpush3.bf16.msra.mxu1 %v1152_v56 }
  0x25   :  { %1058 = vmatprep.subr.bf16.mxu1 %v1153_v57 }
  0x28   :  { %1059 = vmatpush3.bf16.msra.mxu1 %v1153_v57 }
  0xca   :  { %v1014_v63 = vpop.f32.mrf.mxu0  ;;  %v1359_v0 = vpop.f32.mrf.mxu1 }
  0xcb   :  { %v190_v8 = vadd.f32 %v1014_v63, %v1364_v2 }
  0xcc   :  { %v181_v1 = vpop.f32.mrf.mxu0  ;;  %v245_v3 = vpop.f32.mrf.mxu1 }
  0xcd   :  { %v182_v5 = vadd.f32 %v1364_v2, %v181_v1  ;;  %v310_v17 = vmax.f32 %v190_v8, 0.0  ;;  %v246_v53 = vadd.f32 %v1364_v2, %v245_v3 }
  0xce   :  { %v1015_v4 = vpop.f32.mrf.mxu0  ;;  %v1368_v7 = vpop.f32.mrf.mxu1 }
  0xcf   :  { %v193_v6 = vadd.f32 %v1015_v4, %v1364_v2  ;;  %v308_v14 = vmax.f32 %v182_v5, 0.0  ;;  %v324_v62 = vmax.f32 %v246_v53, 0.0  ;;  %v1423_v53 = vld [vmem:[%s1627_s4] ss:$0 sm:$0xff] }
  0xd0   :  { %v184_v9 = vpop.f32.mrf.mxu0  ;;  %v248_v11 = vpop.f32.mrf.mxu1 }
  0xd1   :  { %v185_v10 = vadd.f32 %v1364_v2, %v184_v9  ;;  %v311_v12 = vmax.f32 %v193_v6, 0.0  ;;  %v249_v54 = vadd.f32 %v1364_v2, %v248_v11 }
  0xd2   :  { %v1018_v13 = vpop.f32.mrf.mxu0  ;;  %v1372_v16 = vpop.f32.mrf.mxu1 }
  0xd3   :  { %v309_v15 = vmax.f32 %v185_v10, 0.0  ;;  %v341_v21 = vpack.c.bf16 %v311_v12, %v310_v17  ;;  %v206_v26 = vadd.f32 %v1018_v13, %v1364_v2  ;;  %v325_v1 = vmax.f32 %v249_v54, 0.0 }
  0xd4   :  { %v197_v18 = vpop.f32.mrf.mxu0  ;;  %v261_v20 = vpop.f32.mrf.mxu1  ;;  %v254_v13 = vadd.f32 %v1359_v0, %v1364_v2  ;;  %v270_v0 = vadd.f32 %v1372_v16, %v1364_v2 }
  0xd5   :  { %v340_v19 = vpack.c.bf16 %v309_v15, %v308_v14  ;;  %v198_v23 = vadd.f32 %v1364_v2, %v197_v18  ;;  %v314_v34 = vmax.f32 %v206_v26, 0.0  ;;  %v348_v10 = vpack.c.bf16 %v325_v1, %v324_v62 }
  0xd6   :  { %v1019_v22 = vpop.f32.mrf.mxu0  ;;  %v1376_v25 = vpop.f32.mrf.mxu1  ;;  %v262_v11 = vadd.f32 %v1364_v2, %v261_v20  ;;  %v257_v15 = vadd.f32 %v1368_v7, %v1364_v2 }
  0xd7   :  { %v209_v24 = vadd.f32 %v1019_v22, %v1364_v2  ;;  %1060 = vmatprep.mubr.bf16.mxu1 %v340_v19  ;;  %v312_v32 = vmax.f32 %v198_v23, 0.0  ;;  %v273_v7 = vadd.f32 %v1376_v25, %v1364_v2 }
  0xd8   :  { %v200_v27 = vpop.f32.mrf.mxu0  ;;  %1061 = vmatmul.mubr.bf16.vlgmr.msra.gmra.mxu1 %v341_v21  ;;  %v264_v31 = vpop.f32.mrf.mxu1  ;;  %v328_v18 = vmax.f32 %v262_v11, 0.0  ;;  %v326_v21 = vmax.f32 %v254_v13, 0.0  ;;  %v327_v22 = vmax.f32 %v257_v15, 0.0 }
  0xd9   :  { %v201_v28 = vadd.f32 %v1364_v2, %v200_v27  ;;  %v315_v29 = vmax.f32 %v209_v24, 0.0  ;;  %v265_v12 = vadd.f32 %v1364_v2, %v264_v31  ;;  %v330_v31 = vmax.f32 %v270_v0, 0.0 }
  0xda   :  { %v1022_v30 = vpop.f32.mrf.mxu0  ;;  %v1380_v39 = vpop.f32.mrf.mxu1  ;;  %v349_v27 = vpack.c.bf16 %v327_v22, %v326_v21 }
  0xdb   :  { %v313_v33 = vmax.f32 %v201_v28, 0.0  ;;  %v343_v37 = vpack.c.bf16 %v315_v29, %v314_v34  ;;  %v222_v42 = vadd.f32 %v1022_v30, %v1364_v2  ;;  %v329_v19 = vmax.f32 %v265_v12, 0.0 }
  0xdc   :  { %v213_v35 = vpop.f32.mrf.mxu0  ;;  %v277_v47 = vpop.f32.mrf.mxu1  ;;  %v286_v16 = vadd.f32 %v1380_v39, %v1364_v2  ;;  %v1159_v39 = vld [vmem:[%s1625_s5 + $0x10] sm:$0xff]  }
  0xdd   :  { %v342_v36 = vpack.c.bf16 %v313_v33, %v312_v32  ;;  %v214_v40 = vadd.f32 %v1364_v2, %v213_v35  ;;  %v318_v50 = vmax.f32 %v222_v42, 0.0  ;;  %v350_v24 = vpack.c.bf16 %v329_v19, %v328_v18  ;;  %1102 = vmatprep.subr.bf16.mxu0 %v1159_v39 }
  0xde   :  { %v1023_v38 = vpop.f32.mrf.mxu0  ;;  %v1039_v57 = vpop.f32.mrf.mxu1  ;;  %v278_v20 = vadd.f32 %v1364_v2, %v277_v47  ;;  %v331_v32 = vmax.f32 %v273_v7, 0.0  ;;  %1103 = vmatpush3.bf16.msra.mxu0 %v1159_v39 }
  0xdf   :  { %v225_v41 = vadd.f32 %v1023_v38, %v1364_v2  ;;  %1064 = vmatprep.mubr.bf16.mxu1 %v342_v36  ;;  %v316_v48 = vmax.f32 %v214_v40, 0.0  ;;  %v289_v38 = vadd.f32 %v1039_v57, %v1364_v2 }
  0xe0   :  { %v216_v43 = vpop.f32.mrf.mxu0  ;;  %1065 = vmatmul.mubr.bf16.gmra.mxu1 %v343_v37  ;;  %v280_v3 = vpop.f32.mrf.mxu1  ;;  %v332_v29 = vmax.f32 %v278_v20, 0.0  ;;  %v351_v37 = vpack.c.bf16 %v331_v32, %v330_v31 }
  0xe1   :  { %v217_v44 = vadd.f32 %v1364_v2, %v216_v43  ;;  %v319_v45 = vmax.f32 %v225_v41, 0.0  ;;  %v281_v26 = vadd.f32 %v1364_v2, %v280_v3  ;;  %v334_v41 = vmax.f32 %v286_v16, 0.0 }
  0xe2   :  { %v1026_v46 = vpop.f32.mrf.mxu0  ;;  %v1042_v17 = vpop.f32.mrf.mxu1  ;;  %v335_v42 = vmax.f32 %v289_v38, 0.0 }
  0xe3   :  { %v317_v49 = vmax.f32 %v217_v44, 0.0  ;;  %v345_v55 = vpack.c.bf16 %v319_v45, %v318_v50  ;;  %v238_v60 = vadd.f32 %v1026_v46, %v1364_v2  ;;  %v333_v30 = vmax.f32 %v281_v26, 0.0  ;;  %v1160_v50 = vld [vmem:[%s1625_s5 + $0x8] sm:$0xff]  }
  0xe4   :  { %v229_v51 = vpop.f32.mrf.mxu0  ;;  %v293_v23 = vpop.f32.mrf.mxu1  ;;  %v353_v44 = vpack.c.bf16 %v335_v42, %v334_v41  ;;  %v302_v45 = vadd.f32 %v1042_v17, %v1364_v2  ;;  %1104 = vmatprep.subr.bf16.mxu0 %v1160_v50 }
  0xe5   :  { %v344_v52 = vpack.c.bf16 %v317_v49, %v316_v48  ;;  %v230_v58 = vadd.f32 %v1364_v2, %v229_v51  ;;  %v322_v8 = vmax.f32 %v238_v60, 0.0  ;;  %v352_v34 = vpack.c.bf16 %v333_v30, %v332_v29  ;;  %1105 = vmatpush3.bf16.msra.mxu0 %v1160_v50 }
  0xe6   :  { %v1027_v56 = vpop.f32.mrf.mxu0  ;;  %v1043_v28 = vpop.f32.mrf.mxu1  ;;  %v294_v35 = vadd.f32 %v1364_v2, %v293_v23  ;;  %v338_v47 = vmax.f32 %v302_v45, 0.0 }
  0xe7   :  { %v241_v59 = vadd.f32 %v1027_v56, %v1364_v2  ;;  %1068 = vmatprep.mubr.bf16.mxu1 %v344_v52  ;;  %v320_v5 = vmax.f32 %v230_v58, 0.0  ;;  %v305_v46 = vadd.f32 %v1043_v28, %v1364_v2 }
  0xe8   :  { %v232_v61 = vpop.f32.mrf.mxu0  ;;  %1069 = vmatmul.mubr.bf16.gmra.mxu1 %v345_v55  ;;  %v296_v33 = vpop.f32.mrf.mxu1  ;;  %v336_v25 = vmax.f32 %v294_v35, 0.0 }
  0xe9   :  { %v233_v63 = vadd.f32 %v1364_v2, %v232_v61  ;;  %v323_v4 = vmax.f32 %v241_v59, 0.0  ;;  %v297_v36 = vadd.f32 %v1364_v2, %v296_v33  ;;  %v339_v48 = vmax.f32 %v305_v46, 0.0  ;;  %v1161_v2 = vld [vmem:[%s1625_s5] sm:$0xff]  }
  0xea   :  { %1106 = vmatprep.subr.bf16.mxu0 %v1161_v2 }
  0xeb   :  { %v321_v6 = vmax.f32 %v233_v63, 0.0  ;;  %v347_v14 = vpack.c.bf16 %v323_v4, %v322_v8  ;;  %v337_v40 = vmax.f32 %v297_v36, 0.0  ;;  %v355_v49 = vpack.c.bf16 %v339_v48, %v338_v47  ;;  %1107 = vmatpush3.bf16.msra.mxu0 %v1161_v2 }
  0xed   :  { %v346_v9 = vpack.c.bf16 %v321_v6, %v320_v5  ;;  %v354_v43 = vpack.c.bf16 %v337_v40, %v336_v25 }
  0xef   :  { %1072 = vmatprep.mubr.bf16.mxu1 %v346_v9 }
  0xf0   :  { %1073 = vmatmul.mubr.bf16.gmra.mxu1 %v347_v14 }
  0xf1   :  { %1076 = vmatprep.mubr.bf16.mxu1 %v348_v10 }
  0xf8   :  { %1077 = vmatmul.mubr.bf16.gmra.mxu1 %v349_v27 }
  0xf9   :  { %1080 = vmatprep.mubr.bf16.mxu1 %v350_v24 }
 0x100   :  { %1081 = vmatmul.mubr.bf16.gmra.mxu1 %v351_v37 }
 0x101   :  { %1084 = vmatprep.mubr.bf16.mxu1 %v352_v34 }
 0x108   :  { %1085 = vmatmul.mubr.bf16.gmra.mxu1 %v353_v44 }
 0x109   :  { %1088 = vmatprep.mubr.bf16.mxu1 %v354_v43 }
 0x110   :  { %1089 = vmatmul.mubr.bf16.gmra.mxu1 %v355_v49 }
 0x198   :  { %v1062_v51 = vpop.f32.mrf.mxu1 }
 0x199   :  { %v470_v57 = vadd.f32 %v1062_v51, %v1423_v53 }
 0x19a   :  { %v461_v52 = vpop.f32.mrf.mxu1 }
 0x19b   :  { %v462_v55 = vadd.f32 %v1423_v53, %v461_v52  ;;  %v590_v1 = vmax.f32 %v470_v57, 0.0 }
 0x19c   :  { %v1063_v54 = vpop.f32.mrf.mxu1 }
 0x19d   :  { %v473_v56 = vadd.f32 %v1063_v54, %v1423_v53  ;;  %v588_v62 = vmax.f32 %v462_v55, 0.0 }
 0x19e   :  { %v464_v58 = vpop.f32.mrf.mxu1 }
 0x19f   :  { %v465_v59 = vadd.f32 %v1423_v53, %v464_v58  ;;  %v591_v60 = vmax.f32 %v473_v56, 0.0 }
 0x1a0   :  { %v1066_v61 = vpop.f32.mrf.mxu1 }
 0x1a1   :  { %v589_v63 = vmax.f32 %v465_v59, 0.0  ;;  %v621_v5 = vpack.c.bf16 %v591_v60, %v590_v1  ;;  %v486_v10 = vadd.f32 %v1066_v61, %v1423_v53 }
 0x1a2   :  { %v477_v4 = vpop.f32.mrf.mxu1 }
 0x1a3   :  { %v620_v3 = vpack.c.bf16 %v589_v63, %v588_v62  ;;  %v478_v8 = vadd.f32 %v1423_v53, %v477_v4  ;;  %v594_v18 = vmax.f32 %v486_v10, 0.0 }
 0x1a4   :  { %v1067_v6 = vpop.f32.mrf.mxu1 }
 0x1a5   :  { %v489_v9 = vadd.f32 %v1067_v6, %v1423_v53  ;;  %1108 = vmatprep.mubr.bf16.mxu0 %v620_v3  ;;  %v592_v15 = vmax.f32 %v478_v8, 0.0 }
 0x1a6   :  { %v480_v11 = vpop.f32.mrf.mxu1  ;;  %1109 = vmatmul.mubr.bf16.vlgmr.msra.gmra.mxu0 %v621_v5 }
 0x1a7   :  { %v481_v12 = vadd.f32 %v1423_v53, %v480_v11  ;;  %v595_v13 = vmax.f32 %v489_v9, 0.0 }
 0x1a8   :  { %v1070_v14 = vpop.f32.mrf.mxu1 }
 0x1a9   :  { %v593_v17 = vmax.f32 %v481_v12, 0.0  ;;  %v623_v22 = vpack.c.bf16 %v595_v13, %v594_v18  ;;  %v502_v26 = vadd.f32 %v1070_v14, %v1423_v53 }
 0x1aa   :  { %v493_v19 = vpop.f32.mrf.mxu1 }
 0x1ab   :  { %v622_v21 = vpack.c.bf16 %v593_v17, %v592_v15  ;;  %v494_v24 = vadd.f32 %v1423_v53, %v493_v19  ;;  %v598_v31 = vmax.f32 %v502_v26, 0.0 }
 0x1ac   :  { %v1071_v23 = vpop.f32.mrf.mxu1 }
 0x1ad   :  { %v505_v20 = vadd.f32 %v1071_v23, %v1423_v53  ;;  %1112 = vmatprep.mubr.bf16.mxu0 %v622_v21  ;;  %v596_v29 = vmax.f32 %v494_v24, 0.0 }
 0x1ae   :  { %v496_v27 = vpop.f32.mrf.mxu1  ;;  %1113 = vmatmul.mubr.bf16.gmra.mxu0 %v623_v22 }
 0x1af   :  { %v497_v0 = vadd.f32 %v1423_v53, %v496_v27  ;;  %v599_v7 = vmax.f32 %v505_v20, 0.0 }
 0x1b0   :  { %v1074_v28 = vpop.f32.mrf.mxu1 }
 0x1b1   :  { %v597_v30 = vmax.f32 %v497_v0, 0.0  ;;  %v625_v34 = vpack.c.bf16 %v599_v7, %v598_v31  ;;  %v518_v16 = vadd.f32 %v1074_v28, %v1423_v53 }
 0x1b2   :  { %v509_v32 = vpop.f32.mrf.mxu1 }
 0x1b3   :  { %v624_v33 = vpack.c.bf16 %v597_v30, %v596_v29  ;;  %v510_v36 = vadd.f32 %v1423_v53, %v509_v32  ;;  %v602_v44 = vmax.f32 %v518_v16, 0.0 }
 0x1b4   :  { %v1075_v35 = vpop.f32.mrf.mxu1 }
 0x1b5   :  { %v521_v37 = vadd.f32 %v1075_v35, %v1423_v53  ;;  %1116 = vmatprep.mubr.bf16.mxu0 %v624_v33  ;;  %v600_v42 = vmax.f32 %v510_v36, 0.0 }
 0x1b6   :  { %v512_v38 = vpop.f32.mrf.mxu1  ;;  %1117 = vmatmul.mubr.bf16.gmra.mxu0 %v625_v34 }
 0x1b7   :  { %v513_v25 = vadd.f32 %v1423_v53, %v512_v38  ;;  %v603_v40 = vmax.f32 %v521_v37, 0.0 }
 0x1b8   :  { %v1078_v41 = vpop.f32.mrf.mxu1 }
 0x1b9   :  { %v601_v43 = vmax.f32 %v513_v25, 0.0  ;;  %v627_v47 = vpack.c.bf16 %v603_v40, %v602_v44  ;;  %v534_v50 = vadd.f32 %v1078_v41, %v1423_v53  ;;  %v1460_v25 = vld [vmem:[%s1628_s6] ss:$0 sm:$0xff] }
 0x1ba   :  { %v525_v45 = vpop.f32.mrf.mxu1 }
 0x1bb   :  { %v626_v46 = vpack.c.bf16 %v601_v43, %v600_v42  ;;  %v526_v49 = vadd.f32 %v1423_v53, %v525_v45  ;;  %v606_v57 = vmax.f32 %v534_v50, 0.0 }
 0x1bc   :  { %v1079_v48 = vpop.f32.mrf.mxu1 }
 0x1bd   :  { %v537_v39 = vadd.f32 %v1079_v48, %v1423_v53  ;;  %1120 = vmatprep.mubr.bf16.mxu0 %v626_v46  ;;  %v604_v55 = vmax.f32 %v526_v49, 0.0 }
 0x1be   :  { %v528_v2 = vpop.f32.mrf.mxu1  ;;  %1121 = vmatmul.mubr.bf16.gmra.mxu0 %v627_v47 }
 0x1bf   :  { %v529_v51 = vadd.f32 %v1423_v53, %v528_v2  ;;  %v607_v52 = vmax.f32 %v537_v39, 0.0 }
 0x1c0   :  { %v1082_v54 = vpop.f32.mrf.mxu1 }
 0x1c1   :  { %v605_v56 = vmax.f32 %v529_v51, 0.0  ;;  %v629_v60 = vpack.c.bf16 %v607_v52, %v606_v57  ;;  %v550_v1 = vadd.f32 %v1082_v54, %v1423_v53 }
 0x1c2   :  { %v541_v58 = vpop.f32.mrf.mxu1 }
 0x1c3   :  { %v628_v59 = vpack.c.bf16 %v605_v56, %v604_v55  ;;  %v542_v62 = vadd.f32 %v1423_v53, %v541_v58  ;;  %v610_v10 = vmax.f32 %v550_v1, 0.0 }
 0x1c4   :  { %v1083_v61 = vpop.f32.mrf.mxu1 }
 0x1c5   :  { %v553_v63 = vadd.f32 %v1083_v61, %v1423_v53  ;;  %1124 = vmatprep.mubr.bf16.mxu0 %v628_v59  ;;  %v608_v8 = vmax.f32 %v542_v62, 0.0 }
 0x1c6   :  { %v544_v4 = vpop.f32.mrf.mxu1  ;;  %1125 = vmatmul.mubr.bf16.gmra.mxu0 %v629_v60 }
 0x1c7   :  { %v545_v3 = vadd.f32 %v1423_v53, %v544_v4  ;;  %v611_v5 = vmax.f32 %v553_v63, 0.0 }
 0x1c8   :  { %v1086_v6 = vpop.f32.mrf.mxu1 }
 0x1c9   :  { %v609_v9 = vmax.f32 %v545_v3, 0.0  ;;  %v631_v13 = vpack.c.bf16 %v611_v5, %v610_v10  ;;  %v566_v18 = vadd.f32 %v1086_v6, %v1423_v53 }
 0x1ca   :  { %v557_v11 = vpop.f32.mrf.mxu1 }
 0x1cb   :  { %v630_v12 = vpack.c.bf16 %v609_v9, %v608_v8  ;;  %v558_v15 = vadd.f32 %v1423_v53, %v557_v11  ;;  %v614_v26 = vmax.f32 %v566_v18, 0.0 }
 0x1cc   :  { %v1087_v14 = vpop.f32.mrf.mxu1 }
 0x1cd   :  { %v569_v17 = vadd.f32 %v1087_v14, %v1423_v53  ;;  %1128 = vmatprep.mubr.bf16.mxu0 %v630_v12  ;;  %v612_v24 = vmax.f32 %v558_v15, 0.0 }
 0x1ce   :  { %v560_v19 = vpop.f32.mrf.mxu1  ;;  %1129 = vmatmul.mubr.bf16.gmra.mxu0 %v631_v13 }
 0x1cf   :  { %v561_v21 = vadd.f32 %v1423_v53, %v560_v19  ;;  %v615_v22 = vmax.f32 %v569_v17, 0.0 }
 0x1d0   :  { %v1090_v23 = vpop.f32.mrf.mxu1 }
 0x1d1   :  { %v613_v20 = vmax.f32 %v561_v21, 0.0  ;;  %v633_v7 = vpack.c.bf16 %v615_v22, %v614_v26  ;;  %v582_v31 = vadd.f32 %v1090_v23, %v1423_v53 }
 0x1d2   :  { %v573_v27 = vpop.f32.mrf.mxu1 }
 0x1d3   :  { %v632_v0 = vpack.c.bf16 %v613_v20, %v612_v24  ;;  %v574_v29 = vadd.f32 %v1423_v53, %v573_v27  ;;  %v618_v37 = vmax.f32 %v582_v31, 0.0 }
 0x1d4   :  { %v1091_v28 = vpop.f32.mrf.mxu1 }
 0x1d5   :  { %v585_v30 = vadd.f32 %v1091_v28, %v1423_v53  ;;  %1132 = vmatprep.mubr.bf16.mxu0 %v632_v0  ;;  %v616_v35 = vmax.f32 %v574_v29, 0.0 }
 0x1d6   :  { %v576_v32 = vpop.f32.mrf.mxu1  ;;  %1133 = vmatmul.mubr.bf16.gmra.mxu0 %v633_v7 }
 0x1d7   :  { %v577_v33 = vadd.f32 %v1423_v53, %v576_v32  ;;  %v619_v34 = vmax.f32 %v585_v30, 0.0 }
 0x1d9   :  { %v617_v36 = vmax.f32 %v577_v33, 0.0  ;;  %v635_v38 = vpack.c.bf16 %v619_v34, %v618_v37 }
 0x1db   :  { %v634_v16 = vpack.c.bf16 %v617_v36, %v616_v35 }
 0x1dd   :  { %1136 = vmatprep.mubr.bf16.mxu0 %v634_v16 }
 0x1de   :  { %1137 = vmatmul.mubr.bf16.gmra.mxu0 %v635_v38 }
 0x266   :  { %v1110_v40 = vpop.f32.mrf.mxu0 }
 0x267   :  { %v750_v41 = vadd.f32 %v1110_v40, %v1460_v25 }
 0x268   :  { %v741_v42 = vpop.f32.mrf.mxu0 }
 0x269   :  { %871 = vst.msk [vmem:[%s1629_s7 + $0x10] sm:$0xff] %vm868_vm1, %v750_v41  ;;  %v742_v53 = vadd.f32 %v1460_v25, %v741_v42 }
 0x26a   :  { %v1111_v43 = vpop.f32.mrf.mxu0 }
 0x26b   :  { %869 = vst.msk [vmem:[%s1629_s7] sm:$0xff] %vm868_vm1, %v742_v53  ;;  %v753_v44 = vadd.f32 %v1111_v43, %v1460_v25 }
 0x26c   :  { %v744_v45 = vpop.f32.mrf.mxu0 }
 0x26d   :  { %872 = vst.msk [vmem:[%s1629_s7 + $0x18] sm:$0xff] %vm868_vm1, %v753_v44  ;;  %v745_v46 = vadd.f32 %v1460_v25, %v744_v45 }
 0x26e   :  { %v1114_v47 = vpop.f32.mrf.mxu0 }
 0x26f   :  { %870 = vst.msk [vmem:[%s1629_s7 + $0x8] sm:$0xff] %vm868_vm1, %v745_v46  ;;  %v766_v48 = vadd.f32 %v1114_v47, %v1460_v25 }
 0x270   :  { %v757_v49 = vpop.f32.mrf.mxu0 }
 0x271   :  { %875 = vst.msk [vmem:[%s1629_s7 + $0x30] sm:$0xff] %vm868_vm1, %v766_v48  ;;  %v758_v39 = vadd.f32 %v1460_v25, %v757_v49 }
 0x272   :  { %v1115_v50 = vpop.f32.mrf.mxu0 }
 0x273   :  { %873 = vst.msk [vmem:[%s1629_s7 + $0x20] sm:$0xff] %vm868_vm1, %v758_v39  ;;  %v769_v2 = vadd.f32 %v1115_v50, %v1460_v25 }
 0x274   :  { %v760_v51 = vpop.f32.mrf.mxu0 }
 0x275   :  { %876 = vst.msk [vmem:[%s1629_s7 + $0x38] sm:$0xff] %vm868_vm1, %v769_v2  ;;  %v761_v52 = vadd.f32 %v1460_v25, %v760_v51 }
 0x276   :  { %v1118_v54 = vpop.f32.mrf.mxu0 }
 0x277   :  { %874 = vst.msk [vmem:[%s1629_s7 + $0x28] sm:$0xff] %vm868_vm1, %v761_v52  ;;  %v782_v55 = vadd.f32 %v1118_v54, %v1460_v25 }
 0x278   :  { %v773_v56 = vpop.f32.mrf.mxu0 }
 0x279   :  { %879 = vst.msk [vmem:[%s1629_s7 + $0x50] sm:$0xff] %vm868_vm1, %v782_v55  ;;  %v774_v57 = vadd.f32 %v1460_v25, %v773_v56 }
 0x27a   :  { %v1119_v58 = vpop.f32.mrf.mxu0 }
 0x27b   :  { %877 = vst.msk [vmem:[%s1629_s7 + $0x40] sm:$0xff] %vm868_vm1, %v774_v57  ;;  %v785_v59 = vadd.f32 %v1119_v58, %v1460_v25 }
 0x27c   :  { %v776_v60 = vpop.f32.mrf.mxu0 }
 0x27d   :  { %880 = vst.msk [vmem:[%s1629_s7 + $0x58] sm:$0xff] %vm868_vm1, %v785_v59  ;;  %v777_v61 = vadd.f32 %v1460_v25, %v776_v60 }
 0x27e   :  { %v1122_v62 = vpop.f32.mrf.mxu0 }
 0x27f   :  { %878 = vst.msk [vmem:[%s1629_s7 + $0x48] sm:$0xff] %vm868_vm1, %v777_v61  ;;  %v798_v63 = vadd.f32 %v1122_v62, %v1460_v25 }
 0x280   :  { %v789_v1 = vpop.f32.mrf.mxu0 }
 0x281   :  { %883 = vst.msk [vmem:[%s1629_s7 + $0x70] sm:$0xff] %vm868_vm1, %v798_v63  ;;  %v790_v4 = vadd.f32 %v1460_v25, %v789_v1 }
 0x282   :  { %v1123_v3 = vpop.f32.mrf.mxu0 }
 0x283   :  { %881 = vst.msk [vmem:[%s1629_s7 + $0x60] sm:$0xff] %vm868_vm1, %v790_v4  ;;  %v801_v5 = vadd.f32 %v1123_v3, %v1460_v25 }
 0x284   :  { %v792_v6 = vpop.f32.mrf.mxu0 }
 0x285   :  { %884 = vst.msk [vmem:[%s1629_s7 + $0x78] sm:$0xff] %vm868_vm1, %v801_v5  ;;  %v793_v8 = vadd.f32 %v1460_v25, %v792_v6 }
 0x286   :  { %v1126_v9 = vpop.f32.mrf.mxu0 }
 0x287   :  { %882 = vst.msk [vmem:[%s1629_s7 + $0x68] sm:$0xff] %vm868_vm1, %v793_v8  ;;  %v814_v10 = vadd.f32 %v1126_v9, %v1460_v25 }
 0x288   :  { %v805_v11 = vpop.f32.mrf.mxu0 }
 0x289   :  { %887 = vst.msk [vmem:[%s1629_s7 + $0x90] sm:$0xff] %vm868_vm1, %v814_v10  ;;  %v806_v12 = vadd.f32 %v1460_v25, %v805_v11 }
 0x28a   :  { %v1127_v13 = vpop.f32.mrf.mxu0 }
 0x28b   :  { %885 = vst.msk [vmem:[%s1629_s7 + $0x80] sm:$0xff] %vm868_vm1, %v806_v12  ;;  %v817_v14 = vadd.f32 %v1127_v13, %v1460_v25 }
 0x28c   :  { %v808_v15 = vpop.f32.mrf.mxu0 }
 0x28d   :  { %888 = vst.msk [vmem:[%s1629_s7 + $0x98] sm:$0xff] %vm868_vm1, %v817_v14  ;;  %v809_v17 = vadd.f32 %v1460_v25, %v808_v15 }
 0x28e   :  { %v1130_v18 = vpop.f32.mrf.mxu0 }
 0x28f   :  { %886 = vst.msk [vmem:[%s1629_s7 + $0x88] sm:$0xff] %vm868_vm1, %v809_v17  ;;  %v830_v19 = vadd.f32 %v1130_v18, %v1460_v25 }
 0x290   :  { %v821_v21 = vpop.f32.mrf.mxu0 }
 0x291   :  { %891 = vst.msk [vmem:[%s1629_s7 + $0xb0] sm:$0xff] %vm868_vm1, %v830_v19  ;;  %v822_v22 = vadd.f32 %v1460_v25, %v821_v21 }
 0x292   :  { %v1131_v23 = vpop.f32.mrf.mxu0 }
 0x293   :  { %889 = vst.msk [vmem:[%s1629_s7 + $0xa0] sm:$0xff] %vm868_vm1, %v822_v22  ;;  %v833_v24 = vadd.f32 %v1131_v23, %v1460_v25 }
 0x294   :  { %v824_v20 = vpop.f32.mrf.mxu0 }
 0x295   :  { %892 = vst.msk [vmem:[%s1629_s7 + $0xb8] sm:$0xff] %vm868_vm1, %v833_v24  ;;  %v825_v26 = vadd.f32 %v1460_v25, %v824_v20 }
 0x296   :  { %v1134_v27 = vpop.f32.mrf.mxu0 }
 0x297   :  { %890 = vst.msk [vmem:[%s1629_s7 + $0xa8] sm:$0xff] %vm868_vm1, %v825_v26  ;;  %v846_v0 = vadd.f32 %v1134_v27, %v1460_v25 }
 0x298   :  { %v837_v7 = vpop.f32.mrf.mxu0 }
 0x299   :  { %895 = vst.msk [vmem:[%s1629_s7 + $0xd0] sm:$0xff] %vm868_vm1, %v846_v0  ;;  %v838_v28 = vadd.f32 %v1460_v25, %v837_v7 }
 0x29a   :  { %v1135_v29 = vpop.f32.mrf.mxu0 }
 0x29b   :  { %893 = vst.msk [vmem:[%s1629_s7 + $0xc0] sm:$0xff] %vm868_vm1, %v838_v28  ;;  %v849_v30 = vadd.f32 %v1135_v29, %v1460_v25 }
 0x29c   :  { %v840_v31 = vpop.f32.mrf.mxu0 }
 0x29d   :  { %896 = vst.msk [vmem:[%s1629_s7 + $0xd8] sm:$0xff] %vm868_vm1, %v849_v30  ;;  %v841_v32 = vadd.f32 %v1460_v25, %v840_v31 }
 0x29e   :  { %v1138_v33 = vpop.f32.mrf.mxu0 }
 0x29f   :  { %894 = vst.msk [vmem:[%s1629_s7 + $0xc8] sm:$0xff] %vm868_vm1, %v841_v32  ;;  %v862_v34 = vadd.f32 %v1138_v33, %v1460_v25 }
 0x2a0   :  { %v853_v35 = vpop.f32.mrf.mxu0 }
 0x2a1   :  { %899 = vst.msk [vmem:[%s1629_s7 + $0xf0] sm:$0xff] %vm868_vm1, %v862_v34  ;;  %v854_v36 = vadd.f32 %v1460_v25, %v853_v35 }
 0x2a2   :  { %v1139_v37 = vpop.f32.mrf.mxu0 }
 0x2a3   :  { %897 = vst.msk [vmem:[%s1629_s7 + $0xe0] sm:$0xff] %vm868_vm1, %v854_v36  ;;  %v865_v16 = vadd.f32 %v1139_v37, %v1460_v25 }
 0x2a4   :  { %v856_v38 = vpop.f32.mrf.mxu0 }
 0x2a5   :  { %900 = vst.msk [vmem:[%s1629_s7 + $0xf8] sm:$0xff] %vm868_vm1, %v865_v16  ;;  %v857_v40 = vadd.f32 %v1460_v25, %v856_v38 }
 0x2a7   :  { %898 = vst.msk [vmem:[%s1629_s7 + $0xe8] sm:$0xff] %vm868_vm1, %v857_v40 }

</bundles_post_ra>
